<compile_context>
chip_gen: v6e
topology: v6e:2x2x1
jax: 0.10.0
libtpu: 0.0.40
codegen_flags: <defaults>
</compile_context>

<pallas_src>
import functools
import math
import numpy as np
import jax
import jax.numpy as jnp
from jax.experimental import pallas as pl
from jax.experimental.pallas import tpu as pltpu


def _round_up(v, m):
    return (v + m - 1) // m * m


def _cdiv(a, b):
    return -(-a // b)


def _default_lane_block():
    """256 lanes fills the 256-wide MXU on v6e/v7x; 128 already fills v5e/v4."""
    try:
        kind = jax.devices()[0].device_kind.lower()
    except Exception:
        return 128
    if any(t in kind for t in ("v2", "v3", "v4", "v5")):
        return 128
    return 256


def _vmem_capacity_bytes():
    try:
        info = pltpu.get_tpu_info()
        cap = getattr(info, "vmem_capacity_bytes", None)
        if cap:
            return int(cap)
    except Exception:
        pass
    return 64 * 1024 * 1024   # conservative: v7x per-TensorCore VMEM


@functools.lru_cache(maxsize=8)
def _dft_matrices(N, F, Fp):
    """Real-DFT (ortho) matrices, built once per (N, Fp) with numpy and cached as
    bf16 device arrays (perf feedback: don't rebuild cos/sin on every forward)."""
    n = np.arange(N, dtype=np.float64)
    k = np.arange(F, dtype=np.float64)
    ang = 2.0 * np.pi * np.outer(k, n) / N                        # (F, N)
    inv_sqrt_n = 1.0 / math.sqrt(N)
    cos_f = np.zeros((Fp, N), np.float32)
    sin_f = np.zeros((Fp, N), np.float32)
    cos_f[:F] = (np.cos(ang) * inv_sqrt_n).astype(np.float32)
    sin_f[:F] = (np.sin(ang) * inv_sqrt_n).astype(np.float32)
    # Hermitian completion weights: 1 for DC (and Nyquist iff N even), else 2.
    w = np.full((F,), 2.0, np.float32)
    w[0] = 1.0
    if N % 2 == 0:
        w[N // 2] = 1.0
    cos_i = np.zeros((N, Fp), np.float32)
    sin_i = np.zeros((N, Fp), np.float32)
    cos_i[:, :F] = cos_f[:F].T * w[None, :]
    sin_i[:, :F] = sin_f[:F].T * w[None, :]
    as_bf16 = lambda a: jnp.asarray(a, dtype=jnp.bfloat16)
    return as_bf16(cos_f), as_bf16(sin_f), as_bf16(cos_i), as_bf16(sin_i)


def wave_filters_kernel(x_ref, cf_ref, sf_ref, ci_ref, si_ref, filt_ref, o_ref):
    """One (lane_block, freq_tile) grid step of the folded (N, B*C) problem.

    x_ref:    (N, Lb)   bf16  time-domain signal, batch*channel folded onto lanes
    cf_ref:   (tF, N)   bf16  forward cos DFT rows for this frequency tile
    sf_ref:   (tF, N)   bf16  forward sin DFT rows for this frequency tile
    ci_ref:   (N, tF)   bf16  inverse cos columns (hermitian weights folded in)
    si_ref:   (N, tF)   bf16  inverse sin columns
    filt_ref: (tF, Lb)  f32   Gaussian band filter for this tile (zero on padding)
    o_ref:    (N, Lb)   f32   filtered output, accumulated across frequency tiles
    """
    k = pl.program_id(1)

    @pl.when(k == 0)
    def _():
        o_ref[...] = jnp.zeros_like(o_ref)

    x = x_ref[...]
    f = filt_ref[...]
    # Forward real DFT rows of this tile: re = C@x, im = -(S@x); the sign of the
    # sin path cancels against the inverse, so we work with (C@x, S@x) directly.
    sc = jnp.dot(cf_ref[...], x, preferred_element_type=jnp.float32) * f
    ss = jnp.dot(sf_ref[...], x, preferred_element_type=jnp.float32) * f
    # Inverse real DFT contribution of this frequency tile.
    o_ref[...] += (
        jnp.dot(ci_ref[...], sc.astype(jnp.bfloat16),
                preferred_element_type=jnp.float32)
        + jnp.dot(si_ref[...], ss.astype(jnp.bfloat16),
                  preferred_element_type=jnp.float32))


def wave_filters_forward(x, f_c, f_b, *, lane_block=None, max_freq_tile=512):
    """x: (B, N, C) float32; f_c, f_b: (1, 1, scale) with scale >= C.

    Equivalent to irfft(rfft(x, axis=1, norm='ortho') * gauss_filter,
                        n=N, axis=1, norm='ortho').
    """
    B, N, C = x.shape
    F = N // 2 + 1
    assert f_c.shape[-1] >= C and f_b.shape[-1] >= C, "scale must be >= in_channels"

    # ---- frequency tiling: tF rows per grid step, Fp = tF * nF >= F ----------
    F8 = _round_up(F, 8)
    if F8 <= max_freq_tile:
        tF, nF = F8, 1                          # whole spectrum resident
    else:
        # when tiled, tF is the lane dim of the inverse blocks -> multiple of 128
        best = None
        for cand in (512, 384, 256, 128):
            n_t = _cdiv(F8, cand)
            fp = cand * n_t
            if best is None or fp < best[2]:
                best = (cand, n_t, fp)
        tF, nF, _ = best
    Fp = tF * nF

    # ---- fold batch into lanes -------------------------------------------------
    if lane_block is None:
        lane_block = _default_lane_block()
    L = B * C
    lane_block = min(lane_block, _round_up(L, 128))   # don't over-pad tiny inputs
    Lp = _round_up(L, lane_block)
    nL = Lp // lane_block

    cos_f, sin_f, cos_i, sin_i = _dft_matrices(N, F, Fp)

    # Gaussian band filter (depends on learnable f_c/f_b -> built in traced JAX,
    # but hoisted out of the kernel; single copy, broadcast over the batch lanes).
    # Matches the reference exactly: no epsilon clamp on f_b.
    omega = jnp.linspace(0.0, 0.5, F, dtype=jnp.float32).reshape(F, 1)
    z = (omega - f_c[0, 0, :C]) / (2.0 * f_b[0, 0, :C])           # (F, C)
    filt = jnp.exp(-(z * z))                                      # (F, C)
    filt_bc = jnp.broadcast_to(filt[:, None, :], (F, B, C)).reshape(F, L)
    filt_p = jnp.zeros((Fp, Lp), jnp.float32).at[:F, :L].set(filt_bc)

    # (B, N, C) -> (N, B*C), zero-pad lanes, bf16 for native MXU rate.
    x2d = jnp.transpose(x, (1, 0, 2)).reshape(N, L)
    x2d = jnp.pad(x2d, ((0, 0), (0, Lp - L))).astype(jnp.bfloat16)

    # ---- explicit VMEM budget (perf feedback) ----------------------------------
    nbuf_mat = 1 if nF == 1 else 2
    need = (
        2 * N * lane_block * 2            # x block, double-buffered, bf16
        + 2 * nbuf_mat * tF * N * 2       # cos_f + sin_f blocks
        + 2 * nbuf_mat * N * tF * 2       # cos_i + sin_i blocks
        + 2 * tF * lane_block * 4         # filter block, double-buffered, f32
        + 2 * N * lane_block * 4          # output block, double-buffered, f32
        + 2 * tF * lane_block * 4         # sc/ss f32 intermediates
        + 2 * tF * lane_block * 2         # bf16 casts of sc/ss
    )
    vmem_limit = int(min(max(2 * need + (8 << 20), 32 << 20), _vmem_capacity_bytes()))

    def mat_spec(shape, index_map):
        # Resident matrices (single frequency tile) don't need double-buffering.
        if nF == 1:
            try:
                return pl.BlockSpec(shape, index_map, pipeline_mode=pl.Buffered(1))
            except TypeError:   # older jax without pipeline_mode kwarg
                pass
        return pl.BlockSpec(shape, index_map)

    out2d = pl.pallas_call(
        wave_filters_kernel,
        out_shape=jax.ShapeDtypeStruct((N, Lp), jnp.float32),
        grid=(nL, nF),
        in_specs=[
            pl.BlockSpec((N, lane_block), lambda j, k: (0, j)),        # x
            mat_spec((tF, N), lambda j, k: (k, 0)),                    # cos fwd
            mat_spec((tF, N), lambda j, k: (k, 0)),                    # sin fwd
            mat_spec((N, tF), lambda j, k: (0, k)),                    # cos inv
            mat_spec((N, tF), lambda j, k: (0, k)),                    # sin inv
            pl.BlockSpec((tF, lane_block), lambda j, k: (k, j)),       # filter
        ],
        out_specs=pl.BlockSpec((N, lane_block), lambda j, k: (0, j)),
        compiler_params=pltpu.CompilerParams(
            dimension_semantics=("parallel", "arbitrary"),
            vmem_limit_bytes=vmem_limit),
    )(x2d, cos_f, sin_f, cos_i, sin_i, filt_p)

    # Un-fold: (N, Lp) -> (B, N, C)
    out = out2d[:, :L].reshape(N, B, C).transpose(1, 0, 2)
    return out


def wave_filters_reference(x, f_c, f_b):
    """Pure-JAX reference matching the PyTorch module semantics."""
    B, N, C = x.shape
    F = N // 2 + 1
    omega = jnp.linspace(0.0, 0.5, F).reshape(1, F, 1)
    filt = jnp.exp(-((omega - f_c) / (2.0 * f_b)) ** 2)           # (1, F, scale)
    freq = jnp.fft.rfft(x, axis=1, norm="ortho")
    filtered = freq * filt[:, :, :C]
    return jnp.fft.irfft(filtered, n=N, axis=1, norm="ortho")


if __name__ == "__main__":
    # Small shapes consistent with the module: B=2, in_dim=16, in_channels=scale=8.
    B, N, C = 2, 16, 8
    f_c_mu, f_c_sigma = 0.2, 0.05
    f_b_mu, f_b_sigma = 0.1, 0.02

    key = jax.random.PRNGKey(0)
    kx, kc, kb = jax.random.split(key, 3)
    x = jax.random.normal(kx, (B, N, C), dtype=jnp.float32)
    # deterministic parameter init mirroring nn.init.normal_
    f_c = f_c_mu + f_c_sigma * jax.random.normal(kc, (1, 1, C), dtype=jnp.float32)
    f_b = f_b_mu + f_b_sigma * jax.random.normal(kb, (1, 1, C), dtype=jnp.float32)

    out = wave_filters_forward(x, f_c, f_b)
    out = jax.block_until_ready(out)
    assert out.shape == (B, N, C), out.shape

    ref = wave_filters_reference(x, f_c, f_b)
    # bf16 MXU operands (f32 accumulation) trade ~1e-2 absolute accuracy for
    # native MXU rate, hence the relaxed tolerance.
    np.testing.assert_allclose(np.asarray(out), np.asarray(ref),
                               rtol=2e-2, atol=2e-2)
    print("KERNEL_OK")
</pallas_src>

<mosaic_0001>
module attributes {stable_mosaic.version = 11 : i64} {
  func.func @wave_filters_kernel(%arg0: i32, %arg1: i32, %arg2: memref<16x128xbf16, #tpu.memory_space<vmem>>, %arg3: memref<16x16xbf16, #tpu.memory_space<vmem>>, %arg4: memref<16x16xbf16, #tpu.memory_space<vmem>>, %arg5: memref<16x16xbf16, #tpu.memory_space<vmem>>, %arg6: memref<16x16xbf16, #tpu.memory_space<vmem>>, %arg7: memref<16x128xf32, #tpu.memory_space<vmem>>, %arg8: memref<16x128xf32, #tpu.memory_space<vmem>>) attributes {dimension_semantics = [#tpu.dimension_semantics<parallel>, #tpu.dimension_semantics<arbitrary>], iteration_bounds = array<i64: 1, 1>, scalar_prefetch = 0 : i64, scratch_operands = 0 : i64, tpu.core_type = #tpu.core_type<tc>, window_params = [{transform_indices = @transform_0, window_bounds = array<i64: 16, 128>}, {pipeline_mode = #tpu.pipeline_mode<synchronous>, transform_indices = @transform_1, window_bounds = array<i64: 16, 16>}, {pipeline_mode = #tpu.pipeline_mode<synchronous>, transform_indices = @transform_2, window_bounds = array<i64: 16, 16>}, {pipeline_mode = #tpu.pipeline_mode<synchronous>, transform_indices = @transform_3, window_bounds = array<i64: 16, 16>}, {pipeline_mode = #tpu.pipeline_mode<synchronous>, transform_indices = @transform_4, window_bounds = array<i64: 16, 16>}, {transform_indices = @transform_5, window_bounds = array<i64: 16, 128>}, {transform_indices = @transform_6, window_bounds = array<i64: 16, 128>}]} {
    %c0_i32 = arith.constant 0 : i32
    %0 = arith.cmpi eq, %arg1, %c0_i32 : i32
    %1 = arith.extui %0 : i1 to i32
    %c0_i32_0 = arith.constant 0 : i32
    %2 = arith.cmpi ne, %1, %c0_i32_0 : i32
    scf.if %2 {
      %cst_19 = arith.constant 0.000000e+00 : f32
      %21 = vector.broadcast %cst_19 : f32 to vector<16x128xf32>
      %c0_20 = arith.constant 0 : index
      %c0_21 = arith.constant 0 : index
      %22 = vector.load %arg8[%c0_20, %c0_21] : memref<16x128xf32, #tpu.memory_space<vmem>>, vector<16x128xf32>
      tpu.vector_store %arg8[%c0_20, %c0_21], %21 {strides = array<i32>} : memref<16x128xf32, #tpu.memory_space<vmem>>, vector<16x128xf32>,
    } else {
    }
    %c0 = arith.constant 0 : index
    %c0_1 = arith.constant 0 : index
    %3 = vector.load %arg2[%c0, %c0_1] : memref<16x128xbf16, #tpu.memory_space<vmem>>, vector<16x128xbf16>
    %c0_2 = arith.constant 0 : index
    %c0_3 = arith.constant 0 : index
    %4 = vector.load %arg7[%c0_2, %c0_3] : memref<16x128xf32, #tpu.memory_space<vmem>>, vector<16x128xf32>
    %c0_4 = arith.constant 0 : index
    %c0_5 = arith.constant 0 : index
    %5 = vector.load %arg3[%c0_4, %c0_5] : memref<16x16xbf16, #tpu.memory_space<vmem>>, vector<16x16xbf16>
    %cst = arith.constant dense<0.000000e+00> : vector<16x128xf32>
    %6 = tpu.matmul %5, %3, %cst {dimension_numbers = #tpu.dot_dimension_numbers<[1], [0], [0], [1], [0, 0, 1, 1], [], []>} : vector<16x16xbf16>, vector<16x128xbf16>, vector<16x128xf32> -> vector<16x128xf32>
    %7 = arith.mulf %6, %4 : vector<16x128xf32>
    %c0_6 = arith.constant 0 : index
    %c0_7 = arith.constant 0 : index
    %8 = vector.load %arg4[%c0_6, %c0_7] : memref<16x16xbf16, #tpu.memory_space<vmem>>, vector<16x16xbf16>
    %cst_8 = arith.constant dense<0.000000e+00> : vector<16x128xf32>
    %9 = tpu.matmul %8, %3, %cst_8 {dimension_numbers = #tpu.dot_dimension_numbers<[1], [0], [0], [1], [0, 0, 1, 1], [], []>} : vector<16x16xbf16>, vector<16x128xbf16>, vector<16x128xf32> -> vector<16x128xf32>
    %10 = arith.mulf %9, %4 : vector<16x128xf32>
    %c0_9 = arith.constant 0 : index
    %c0_10 = arith.constant 0 : index
    %11 = vector.load %arg8[%c0_9, %c0_10] : memref<16x128xf32, #tpu.memory_space<vmem>>, vector<16x128xf32>
    %c0_11 = arith.constant 0 : index
    %c0_12 = arith.constant 0 : index
    %12 = vector.load %arg5[%c0_11, %c0_12] : memref<16x16xbf16, #tpu.memory_space<vmem>>, vector<16x16xbf16>
    %13 = arith.truncf %7 : vector<16x128xf32> to vector<16x128xbf16>
    %cst_13 = arith.constant dense<0.000000e+00> : vector<16x128xf32>
    %14 = tpu.matmul %12, %13, %cst_13 {dimension_numbers = #tpu.dot_dimension_numbers<[1], [0], [0], [1], [0, 0, 1, 1], [], []>} : vector<16x16xbf16>, vector<16x128xbf16>, vector<16x128xf32> -> vector<16x128xf32>
    %c0_14 = arith.constant 0 : index
    %c0_15 = arith.constant 0 : index
    %15 = vector.load %arg6[%c0_14, %c0_15] : memref<16x16xbf16, #tpu.memory_space<vmem>>, vector<16x16xbf16>
    %16 = arith.truncf %10 : vector<16x128xf32> to vector<16x128xbf16>
    %cst_16 = arith.constant dense<0.000000e+00> : vector<16x128xf32>
    %17 = tpu.matmul %15, %16, %cst_16 {dimension_numbers = #tpu.dot_dimension_numbers<[1], [0], [0], [1], [0, 0, 1, 1], [], []>} : vector<16x16xbf16>, vector<16x128xbf16>, vector<16x128xf32> -> vector<16x128xf32>
    %18 = arith.addf %14, %17 : vector<16x128xf32>
    %19 = arith.addf %11, %18 : vector<16x128xf32>
    %c0_17 = arith.constant 0 : index
    %c0_18 = arith.constant 0 : index
    %20 = vector.load %arg8[%c0_17, %c0_18] : memref<16x128xf32, #tpu.memory_space<vmem>>, vector<16x128xf32>
    tpu.vector_store %arg8[%c0_17, %c0_18], %19 {strides = array<i32>} : memref<16x128xf32, #tpu.memory_space<vmem>>, vector<16x128xf32>,
    return
  }
  func.func @transform_0(%arg0: i32, %arg1: i32) -> (i32, i32) {
    %c0_i32 = arith.constant 0 : i32
    %c0_i32_0 = arith.constant 0 : i32
    return %c0_i32, %arg0 : i32, i32
  }
  func.func @transform_1(%arg0: i32, %arg1: i32) -> (i32, i32) {
    %c0_i32 = arith.constant 0 : i32
    %c0_i32_0 = arith.constant 0 : i32
    return %arg1, %c0_i32 : i32, i32
  }
  func.func @transform_2(%arg0: i32, %arg1: i32) -> (i32, i32) {
    %c0_i32 = arith.constant 0 : i32
    %c0_i32_0 = arith.constant 0 : i32
    return %arg1, %c0_i32 : i32, i32
  }
  func.func @transform_3(%arg0: i32, %arg1: i32) -> (i32, i32) {
    %c0_i32 = arith.constant 0 : i32
    %c0_i32_0 = arith.constant 0 : i32
    return %c0_i32, %arg1 : i32, i32
  }
  func.func @transform_4(%arg0: i32, %arg1: i32) -> (i32, i32) {
    %c0_i32 = arith.constant 0 : i32
    %c0_i32_0 = arith.constant 0 : i32
    return %c0_i32, %arg1 : i32, i32
  }
  func.func @transform_5(%arg0: i32, %arg1: i32) -> (i32, i32) {
    %c0_i32 = arith.constant 0 : i32
    return %arg1, %arg0 : i32, i32
  }
  func.func @transform_6(%arg0: i32, %arg1: i32) -> (i32, i32) {
    %c0_i32 = arith.constant 0 : i32
    %c0_i32_0 = arith.constant 0 : i32
    return %c0_i32, %arg0 : i32, i32
  }
}

</mosaic_0001>

<bundles_post_ra>
// kernel: tpu_custom_call.1
= control target key start
LH: loop header
LB: loop body
LE: loop exit
PB: predicated region body
PF: predicated region fallthrough
CT: control target
= control target key end

     0   :  { %11 = vsyncpa [#allocation3], 0  ;;  %s663_s0 = inlined_call_operand.hbm [shape: bf16[16,128], index: 0, kind: input, shape index: {}]   ;;  %s664_s1 = inlined_call_operand.hbm [shape: bf16[16,16], index: 1, kind: input, shape index: {}]   ;;  %s665_s2 = inlined_call_operand.hbm [shape: bf16[16,16], index: 2, kind: input, shape index: {}]   ;;  %s666_s3 = inlined_call_operand.hbm [shape: bf16[16,16], index: 3, kind: input, shape index: {}]   ;;  %s667_s4 = inlined_call_operand.hbm [shape: bf16[16,16], index: 4, kind: input, shape index: {}]   ;;  %s668_s5 = inlined_call_operand.hbm [shape: f32[16,128], index: 5, kind: input, shape index: {}]   ;;  %s669_s6 = inlined_call_operand.hbm [shape: f32[16,128], index: 6, kind: output, shape index: {}]  }
   0x1   :  { %12 = vsyncpa [#allocation6], 0 }
   0x2   :  { %13 = vsyncpa [#allocation9], 0 }
   0x3   :  { %14 = vsyncpa [#allocation12], 0 }
   0x4   :  { %15 = vsyncpa [#allocation4], 0  ;;  %s569_s21 = smov [#allocation5]   ;;  %s570_s23 = smov [#allocation8]  }
   0x5   :  { %s33_s22 = sshll.u32 %s569_s21, 4  ;;  %s57_s24 = sshll.u32 %s570_s23, 4  ;;  %s34_s22 = int_to_ptr.vmem [resolvable:$true] %s33_s22  ;;  %s58_s24 = int_to_ptr.vmem [resolvable:$true] %s57_s24 }
   0x6   :  { %s427_s25 = scalar_lea.vmem %s34_s22, 128  ;;  %p432_p1 = scmp.lt.s32.totalorder %s34_s22, %s34_s22 }
   0x7   :  { %p428_p0 = scmp.ne.s32.totalorder %s34_s22, %s427_s25  ;;  %p433_p2 = scmp.lt.s32.totalorder %s427_s25, %s427_s25 }
   0x9   :  { %p434_p3 = por %p433_p2, %p432_p1 }
   0xb   :  { %p435_p4 = pnand %p434_p3, %p428_p0 }
   0xd   :  { %438 = shalt.err (!%p435_p4)
}
   0xe   :  { %s571_s26 = smov 64   ;;  %s572_s27 = smov 4  }
   0xf   :  { %39 = dma.hbm_to_vmem [thread:$0]  %s664_s1, 128, %s34_s22, [#allocation6], %s571_s26, %s571_s26, %s572_s27  }
  0x10   :  { %s447_s30 = scalar_lea.vmem %s58_s24, 128  ;;  %p452_p6 = scmp.lt.s32.totalorder %s58_s24, %s58_s24 }
  0x11   :  { %p448_p5 = scmp.ne.s32.totalorder %s58_s24, %s447_s30  ;;  %p453_p7 = scmp.lt.s32.totalorder %s447_s30, %s447_s30 }
  0x13   :  { %p454_p8 = por %p453_p7, %p452_p6 }
  0x15   :  { %p455_p9 = pnand %p454_p8, %p448_p5 }
  0x17   :  { %458 = shalt.err (!%p455_p9)
}
  0x18   :  { %63 = dma.hbm_to_vmem [thread:$0]  %s666_s3, 128, %s58_s24, [#allocation9], %s571_s26, %s571_s26, %s572_s27  }
  0x19   :  { %s573_s9 = smov [#allocation2]   ;;  %s574_s11 = smov [#allocation7]  }
  0x1a   :  { %s21_s10 = sshll.u32 %s573_s9, 4  ;;  %s45_s12 = sshll.u32 %s574_s11, 4  ;;  %s22_s10 = int_to_ptr.vmem [resolvable:$true] %s21_s10  ;;  %s46_s12 = int_to_ptr.vmem [resolvable:$true] %s45_s12 }
  0x1b   :  { %s467_s1 = scalar_lea.vmem %s22_s10, 128  ;;  %p472_p11 = scmp.lt.s32.totalorder %s22_s10, %s22_s10 }
  0x1c   :  { %p468_p10 = scmp.ne.s32.totalorder %s22_s10, %s467_s1  ;;  %p473_p12 = scmp.lt.s32.totalorder %s467_s1, %s467_s1 }
  0x1e   :  { %p474_p13 = por %p473_p12, %p472_p11 }
  0x20   :  { %p475_p0 = pnand %p474_p13, %p468_p10 }
  0x22   :  { %478 = shalt.err (!%p475_p0)
}
  0x23   :  { %27 = dma.hbm_to_vmem [thread:$0]  %s663_s0, 128, %s22_s10, [#allocation3], %s571_s26, %s571_s26, %s572_s27  }
  0x24   :  { %s487_s3 = scalar_lea.vmem %s46_s12, 128  ;;  %p492_p2 = scmp.lt.s32.totalorder %s46_s12, %s46_s12 }
  0x25   :  { %p488_p1 = scmp.ne.s32.totalorder %s46_s12, %s487_s3  ;;  %p493_p3 = scmp.lt.s32.totalorder %s487_s3, %s487_s3 }
  0x27   :  { %p494_p4 = por %p493_p3, %p492_p2 }
  0x29   :  { %p495_p5 = pnand %p494_p4, %p488_p1 }
  0x2b   :  { %498 = shalt.err (!%p495_p5)
}
  0x2c   :  { %51 = dma.hbm_to_vmem [thread:$0]  %s665_s2, 128, %s46_s12, [#allocation6], %s571_s26, %s571_s26, %s572_s27  }
  0x2d   :  { %s575_s17 = smov [#allocation10]   ;;  %s576_s19 = smov [#allocation11]  }
  0x2e   :  { %s69_s18 = sshll.u32 %s575_s17, 4  ;;  %s81_s20 = sshll.u32 %s576_s19, 4  ;;  %s70_s18 = int_to_ptr.vmem [resolvable:$true] %s69_s18  ;;  %s82_s20 = int_to_ptr.vmem [resolvable:$true] %s81_s20 }
  0x2f   :  { %s507_s0 = scalar_lea.vmem %s70_s18, 128  ;;  %p512_p7 = scmp.lt.s32.totalorder %s70_s18, %s70_s18 }
  0x30   :  { %p508_p6 = scmp.ne.s32.totalorder %s70_s18, %s507_s0  ;;  %p513_p8 = scmp.lt.s32.totalorder %s507_s0, %s507_s0 }
  0x32   :  { %p514_p9 = por %p513_p8, %p512_p7 }
  0x34   :  { %p515_p10 = pnand %p514_p9, %p508_p6 }
  0x36   :  { %518 = shalt.err (!%p515_p10)
}
  0x37   :  { %75 = dma.hbm_to_vmem [thread:$0]  %s667_s4, 128, %s70_s18, [#allocation9], %s571_s26, %s571_s26, %s572_s27  }
  0x38   :  { %s527_s2 = scalar_lea.vmem %s82_s20, 256  ;;  %p532_p12 = scmp.lt.s32.totalorder %s82_s20, %s82_s20 }
  0x39   :  { %p528_p11 = scmp.ne.s32.totalorder %s82_s20, %s527_s2  ;;  %p533_p13 = scmp.lt.s32.totalorder %s527_s2, %s527_s2 }
  0x3b   :  { %p534_p0 = por %p533_p13, %p532_p12 }
  0x3d   :  { %p535_p1 = pnand %p534_p0, %p528_p11 }
  0x3f   :  { %538 = shalt.err (!%p535_p1)
}
  0x40   :  { %s577_s23 = smov 128   ;;  %s578_s24 = smov 8  }
  0x41   :  { %87 = dma.hbm_to_vmem [thread:$0]  %s668_s5, 256, %s82_s20, [#allocation12], %s577_s23, %s577_s23, %s578_s24  }
  0x42   :  { %559 = dma.done.wait [#allocation3], 128  }
  0x43   :  { %560 = vsyncadd [#allocation3], 4294967168 }
  0x44   :  { %561 = dma.done.wait [#allocation6], 256  }
  0x45   :  { %562 = vsyncadd [#allocation6], 4294967040 }
  0x46   :  { %563 = dma.done.wait [#allocation9], 256  }
  0x47   :  { %564 = vsyncadd [#allocation9], 4294967040 }
  0x48   :  { %565 = dma.done.wait [#allocation12], 256  }
  0x49   :  { %566 = vsyncadd [#allocation12], 4294967040  ;;  %v579_v0 = vmov 0.0   ;;  %vm580_vm0 = vmmov 0   ;;  %v414_v1 = vld [vmem:[#allocation2] sm:$0xff]   ;;  %v415_v2 = vld [vmem:[#allocation5] sm:$0xff]  }
  0x4a   :  { %377 = vmatprep.subr.bf16.mxu0 %v579_v0  ;;  %383 = vmatprep.subr.bf16.mxu1 %v579_v0  ;;  %vm130_vm1 = vcmask 130048   ;;  %v416_v3 = vld [vmem:[#allocation7] sm:$0xff]   ;;  %v115_v6 = vld [vmem:[#allocation11] sm:$0xff]  ;;  %v417_v20 = vld [vmem:[#allocation10] sm:$0xff]   ;;  %s581_s4 = smov [#allocation13]  }
  0x4b   :  { %379 = vmatprep.mubr.msk.bf16.mxu0 %vm580_vm0, %v579_v0  ;;  %385 = vmatprep.mubr.msk.bf16.mxu1 %vm580_vm0, %v579_v0  ;;  %v116_v9 = vld [vmem:[#allocation11 + $0x8] sm:$0xff]  ;;  %v418_v21 = vld [vmem:[#allocation8] sm:$0xff]   ;;  %s345_s5 = sshll.u32 %s581_s4, 4  ;;  %s346_s5 = int_to_ptr.vmem [resolvable:$true] %s345_s5 }
  0x4c   :  { %378 = vmatpush3.bf16.msra.mxu0 %v414_v1  ;;  %384 = vmatpush3.bf16.msra.mxu1 %v414_v1  ;;  %s539_s26 = scalar_lea.vmem %s346_s5, 256  ;;  %p544_p3 = scmp.lt.s32.totalorder %s346_s5, %s346_s5 }
  0x4d   :  { %389 = vmatprep.subr.bf16.mxu0 %v579_v0  ;;  %395 = vmatprep.subr.bf16.mxu1 %v579_v0  ;;  %p540_p2 = scmp.ne.s32.totalorder %s346_s5, %s539_s26  ;;  %p545_p4 = scmp.lt.s32.totalorder %s539_s26, %s539_s26 }
  0x4f   :  { %380 = vmatmul.mubr.msk.bf16.vlgmr.msra.gmra.mxu0 %vm130_vm1, %v415_v2  ;;  %386 = vmatmul.mubr.msk.bf16.vlgmr.msra.gmra.mxu1 %vm130_vm1, %v416_v3  ;;  %p546_p5 = por %p545_p4, %p544_p3 }
  0x50   :  { %391 = vmatprep.mubr.msk.bf16.mxu0 %vm580_vm0, %v579_v0  ;;  %397 = vmatprep.mubr.msk.bf16.mxu1 %vm580_vm0, %v579_v0 }
  0x51   :  { %p547_p6 = pnand %p546_p5, %p540_p2 }
 0x10f   :  { %v168_v4 = vpop.f32.mrf.mxu0  ;;  %v221_v5 = vpop.f32.mrf.mxu1 }
 0x110   :  { %v175_v12 = vmul.f32 %v168_v4, %v115_v6  ;;  %v228_v13 = vmul.f32 %v221_v5, %v115_v6 }
 0x111   :  { %v381_v7 = vpop.f32.mrf.mxu0  ;;  %v387_v8 = vpop.f32.mrf.mxu1 }
 0x113   :  { %v171_v10 = vpop.f32.mrf.mxu0  ;;  %v224_v11 = vpop.f32.mrf.mxu1 }
 0x114   :  { %v176_v14 = vmul.f32 %v171_v10, %v116_v9  ;;  %v229_v15 = vmul.f32 %v224_v11, %v116_v9 }
 0x115   :  { %v382_v16 = vpop.f32.mrf.mxu0  ;;  %v388_v17 = vpop.f32.mrf.mxu1 }
 0x116   :  { %v234_v18 = vpack.c.bf16 %v176_v14, %v175_v12  ;;  %v237_v19 = vpack.c.bf16 %v229_v15, %v228_v13 }
 0x118   :  { %390 = vmatpush3.bf16.msra.mxu0 %v237_v19  ;;  %396 = vmatpush3.bf16.msra.mxu1 %v234_v18 }
 0x11b   :  { %392 = vmatmul.mubr.msk.bf16.vlgmr.msra.gmra.mxu0 %vm130_vm1, %v417_v20  ;;  %398 = vmatmul.mubr.msk.bf16.vlgmr.msra.gmra.mxu1 %vm130_vm1, %v418_v21 }
 0x1db   :  { %v280_v22 = vpop.f32.mrf.mxu0  ;;  %v329_v23 = vpop.f32.mrf.mxu1 }
 0x1dc   :  { %v330_v24 = vadd.f32 %v329_v23, %v280_v22 }
 0x1dd   :  { %v393_v25 = vpop.f32.mrf.mxu0  ;;  %v399_v26 = vpop.f32.mrf.mxu1 }
 0x1de   :  { %338 = vst [vmem:[#allocation13] sm:$0xff] %v330_v24 }
 0x1df   :  { %v283_v27 = vpop.f32.mrf.mxu0  ;;  %v332_v28 = vpop.f32.mrf.mxu1 }
 0x1e0   :  { %v333_v29 = vadd.f32 %v332_v28, %v283_v27 }
 0x1e1   :  { %v394_v30 = vpop.f32.mrf.mxu0  ;;  %v400_v31 = vpop.f32.mrf.mxu1 }
 0x1e2   :  { %339 = vst [vmem:[#allocation13 + $0x8] sm:$0xff] %v333_v29 }
 0x1e3   :  { %550 = shalt.err (!%p547_p6)
}
 0x1e4   :  { %351 = dma.vmem_to_hbm [thread:$0]  %s346_s5, 256, %s669_s6, [#allocation4], %s577_s23, %s577_s23, %s578_s24  }
 0x1e5   :  { %567 = dma.done.wait [#allocation4], 256  }
 0x1e6   :  { %568 = vsyncadd [#allocation4], 4294967040 }
 0x1e7   :  { %355 = vsyncpa [#allocation3], 1 }
 0x1e8   :  { %356 = vsyncpa [#allocation6], 1 }
 0x1e9   :  { %357 = vsyncpa [#allocation9], 1 }
 0x1ea   :  { %358 = vsyncpa [#allocation12], 1 }
 0x1eb   :  { %359 = vsyncpa [#allocation4], 1 }

</bundles_post_ra>
